<compile_context>
chip_gen: v6e
topology: v6e:2x2x1
jax: 0.10.0
libtpu: 0.0.40
codegen_flags: <defaults>
</compile_context>

<pallas_src>
import functools

import jax
import jax.numpy as jnp
from jax import lax
from jax.experimental import pallas as pl
from jax.experimental.pallas import tpu as pltpu


def double_conv_kernel(x_ref, m1_ref, b1_ref, m2_ref, b2_ref, o_ref):
    # x_ref:  (1, H, W*Cin)        one batch element, rows flattened as (W,Cin)
    # m1_ref: (3, W*Cin, W*Cout)   per-ky row-matmul matrices for conv1
    # b1_ref: (1, W*Cout)          bias tiled across W
    # m2_ref: (3, W*Cout, W*Cout)  per-ky row-matmul matrices for conv2
    # b2_ref: (1, W*Cout)
    # o_ref:  (1, H, W*Cout)       lane-dense output tile
    H = o_ref.shape[1]

    def shifted(rows, oy):
        # rows shifted so that result[y] = rows[y + oy], zero-filled outside
        # [0, H).  oy in {-1, 0, +1}.  Roll uses the XLU; mask uses the VPU.
        if oy == 0:
            return rows
        rolled = pltpu.roll(rows, shift=(-oy) % H, axis=0)
        yid = lax.broadcasted_iota(jnp.int32, rows.shape, 0)
        if oy > 0:
            keep = yid < (H - oy)
        else:
            keep = yid >= (-oy)
        return jnp.where(keep, rolled, 0.0)

    def conv_relu(rows, m_ref, b_ref):
        # rows: (H, W*Cin_like) f32; returns (H, W*Cout) f32 after bias+ReLU.
        acc = jnp.zeros((H, m_ref.shape[-1]), jnp.float32)
        for ky in range(3):  # 3 taps, statically unrolled
            acc = acc + jnp.dot(shifted(rows, ky - 1), m_ref[ky],
                                preferred_element_type=jnp.float32)
        return jnp.maximum(acc + b_ref[...], 0.0)

    x = x_ref[0].astype(jnp.float32)        # (H, W*Cin)
    y1 = conv_relu(x, m1_ref, b1_ref)       # (H, W*Cout) -- stays in registers
    y2 = conv_relu(y1, m2_ref, b2_ref)      # (H, W*Cout)
    o_ref[0] = y2.astype(o_ref.dtype)       # dense (H, W*Cout) store


def _build_row_matmul_weights(w, W):
    """Expand HWIO 3x3 weights into per-ky (W*Cin, W*Cout) row matrices.

    M[ky][xi*Cin + ci, xo*Cout + co] = w[ky, xi - xo + 1, ci, co]
    (zero when the dx tap is out of range), so a full padded-W conv row is
    `rows @ M[ky]` summed over ky.
    """
    KH, KW, Cin, Cout = w.shape
    xi = jnp.arange(W)[:, None]            # input column index
    xo = jnp.arange(W)[None, :]            # output column index
    kx = xi - xo + 1                       # (W, W) tap index
    valid = (kx >= 0) & (kx < KW)
    kx_c = jnp.clip(kx, 0, KW - 1)
    g = w[:, kx_c]                                         # (KH, W, W, Cin, Cout)
    g = jnp.where(valid[None, :, :, None, None], g, 0.0)
    m = jnp.transpose(g, (0, 1, 3, 2, 4)).reshape(KH, W * Cin, W * Cout)
    return m


@functools.partial(jax.jit, static_argnames=())
def double_convolution(x_nchw, w1, b1, w2, b2):
    """Forward pass of DoubleConvolution.

    x_nchw: (B, Cin, H, W) float32
    w1: (3, 3, Cin, Cout) HWIO, b1: (Cout,)
    w2: (3, 3, Cout, Cout) HWIO, b2: (Cout,)
    returns (B, Cout, H, W) float32
    """
    B, Cin, H, W = x_nchw.shape
    Cout = w1.shape[-1]

    # NCHW -> row-flattened NHWC: (B, H, W*Cin).  No HBM padding pass.
    x_rows = jnp.transpose(x_nchw, (0, 2, 3, 1)).reshape(B, H, W * Cin)

    m1 = _build_row_matmul_weights(w1, W)                  # (3, W*Cin,  W*Cout)
    m2 = _build_row_matmul_weights(w2, W)                  # (3, W*Cout, W*Cout)
    b1_row = jnp.tile(b1, W).reshape(1, W * Cout)
    b2_row = jnp.tile(b2, W).reshape(1, W * Cout)

    # Advisory cost hint (useful conv flops + HBM bytes actually touched).
    flops = 2 * B * H * W * 9 * (Cin * Cout + Cout * Cout)
    bytes_accessed = 4 * (B * H * W * Cin + B * H * W * Cout
                          + 3 * W * Cin * W * Cout + 3 * W * Cout * W * Cout
                          + 2 * W * Cout)

    out_rows = pl.pallas_call(
        double_conv_kernel,
        out_shape=jax.ShapeDtypeStruct((B, H, W * Cout), x_nchw.dtype),
        grid_spec=pltpu.PrefetchScalarGridSpec(
            num_scalar_prefetch=0,
            grid=(B,),
            in_specs=[
                pl.BlockSpec((1, H, W * Cin), lambda b: (b, 0, 0)),
                pl.BlockSpec((3, W * Cin, W * Cout), lambda b: (0, 0, 0)),
                pl.BlockSpec((1, W * Cout), lambda b: (0, 0)),
                pl.BlockSpec((3, W * Cout, W * Cout), lambda b: (0, 0, 0)),
                pl.BlockSpec((1, W * Cout), lambda b: (0, 0)),
            ],
            out_specs=pl.BlockSpec((1, H, W * Cout), lambda b: (b, 0, 0)),
        ),
        compiler_params=pltpu.CompilerParams(
            dimension_semantics=("parallel",),
            vmem_limit_bytes=32 * 1024 * 1024),
        cost_estimate=pl.CostEstimate(
            flops=flops, transcendentals=0, bytes_accessed=bytes_accessed),
    )(x_rows, m1, b1_row, m2, b2_row)

    # (B, H, W*Cout) -> NHWC -> NCHW to match the PyTorch module's convention.
    out_nhwc = out_rows.reshape(B, H, W, Cout)
    return jnp.transpose(out_nhwc, (0, 3, 1, 2))


def _reference(x_nchw, w1, b1, w2, b2):
    """Pure-JAX reference (lax.conv) for validation."""
    x = jnp.transpose(x_nchw, (0, 2, 3, 1))
    dn = ("NHWC", "HWIO", "NHWC")
    y = lax.conv_general_dilated(x, w1, (1, 1), "SAME", dimension_numbers=dn)
    y = jnp.maximum(y + b1, 0.0)
    y = lax.conv_general_dilated(y, w2, (1, 1), "SAME", dimension_numbers=dn)
    y = jnp.maximum(y + b2, 0.0)
    return jnp.transpose(y, (0, 3, 1, 2))


if __name__ == "__main__":
    # Small shapes: batch=2, in_channels=4, out_channels=8, spatial 16x16.
    B, Cin, Cout, H, W = 2, 4, 8, 16, 16

    key = jax.random.PRNGKey(0)
    kx, k1, kb1, k2, kb2 = jax.random.split(key, 5)

    x = jax.random.normal(kx, (B, Cin, H, W), jnp.float32)

    # Deterministic parameter init (PyTorch-style uniform bound 1/sqrt(fan_in)).
    bound1 = 1.0 / (Cin * 9) ** 0.5
    w1 = jax.random.uniform(k1, (3, 3, Cin, Cout), jnp.float32, -bound1, bound1)
    b1 = jax.random.uniform(kb1, (Cout,), jnp.float32, -bound1, bound1)
    bound2 = 1.0 / (Cout * 9) ** 0.5
    w2 = jax.random.uniform(k2, (3, 3, Cout, Cout), jnp.float32, -bound2, bound2)
    b2 = jax.random.uniform(kb2, (Cout,), jnp.float32, -bound2, bound2)

    out = double_convolution(x, w1, b1, w2, b2)
    out = jax.block_until_ready(out)

    ref = _reference(x, w1, b1, w2, b2)
    assert out.shape == (B, Cout, H, W)
    assert jnp.allclose(out, ref, atol=1e-5, rtol=1e-5), "mismatch vs reference"

    print("KERNEL_OK")
</pallas_src>

<mosaic_0001>
module attributes {stable_mosaic.version = 11 : i64} {
  func.func @double_conv_kernel(%arg0: i32, %arg1: memref<1x16x64xf32, #tpu.memory_space<vmem>>, %arg2: memref<3x64x128xf32, #tpu.memory_space<vmem>>, %arg3: memref<1x128xf32, #tpu.memory_space<vmem>>, %arg4: memref<3x128x128xf32, #tpu.memory_space<vmem>>, %arg5: memref<1x128xf32, #tpu.memory_space<vmem>>, %arg6: memref<1x16x128xf32, #tpu.memory_space<vmem>>) attributes {dimension_semantics = [#tpu.dimension_semantics<parallel>], iteration_bounds = array<i64: 2>, scalar_prefetch = 0 : i64, scratch_operands = 0 : i64, tpu.core_type = #tpu.core_type<tc>, window_params = [{transform_indices = @transform_0, window_bounds = array<i64: 1, 16, 64>}, {pipeline_mode = #tpu.pipeline_mode<synchronous>, transform_indices = @transform_1, window_bounds = array<i64: 3, 64, 128>}, {pipeline_mode = #tpu.pipeline_mode<synchronous>, transform_indices = @transform_2, window_bounds = array<i64: 1, 128>}, {pipeline_mode = #tpu.pipeline_mode<synchronous>, transform_indices = @transform_3, window_bounds = array<i64: 3, 128, 128>}, {pipeline_mode = #tpu.pipeline_mode<synchronous>, transform_indices = @transform_4, window_bounds = array<i64: 1, 128>}, {transform_indices = @transform_5, window_bounds = array<i64: 1, 16, 128>}]} {
    %c0 = arith.constant 0 : index
    %c0_0 = arith.constant 0 : index
    %c0_1 = arith.constant 0 : index
    %0 = vector.load %arg1[%c0, %c0_0, %c0_1] : memref<1x16x64xf32, #tpu.memory_space<vmem>>, vector<1x16x64xf32>
    %1 = vector.shape_cast %0 : vector<1x16x64xf32> to vector<16x64xf32>
    %cst = arith.constant 0.000000e+00 : f32
    %2 = vector.broadcast %cst : f32 to vector<16x128xf32>
    %c1_i32 = arith.constant 1 : i32
    %3 = tpu.dynamic_rotate %1 by %c1_i32 dim 0 : vector<16x64xf32>, i32 -> vector<16x64xf32>
    %4 = tpu.iota {dimensions = array<i32: 0>} : vector<16x64xi32>
    %c1_i32_2 = arith.constant 1 : i32
    %5 = vector.broadcast %c1_i32_2 : i32 to vector<16x64xi32>
    %6 = arith.cmpi sge, %4, %5 : vector<16x64xi32>
    %cst_3 = arith.constant 0.000000e+00 : f32
    %7 = vector.broadcast %cst_3 : f32 to vector<16x64xf32>
    %8 = arith.select %6, %3, %7 : vector<16x64xi1>, vector<16x64xf32>
    %c0_4 = arith.constant 0 : index
    %c0_5 = arith.constant 0 : index
    %c0_6 = arith.constant 0 : index
    %9 = vector.load %arg2[%c0_4, %c0_5, %c0_6] : memref<3x64x128xf32, #tpu.memory_space<vmem>>, vector<1x64x128xf32>
    %10 = vector.shape_cast %9 : vector<1x64x128xf32> to vector<64x128xf32>
    %cst_7 = arith.constant dense<0.000000e+00> : vector<16x128xf32>
    %11 = tpu.matmul %8, %10, %cst_7 {dimension_numbers = #tpu.dot_dimension_numbers<[1], [0], [0], [1], [0, 0, 1, 1], [], []>} : vector<16x64xf32>, vector<64x128xf32>, vector<16x128xf32> -> vector<16x128xf32>
    %12 = arith.addf %2, %11 : vector<16x128xf32>
    %c1 = arith.constant 1 : index
    %c0_8 = arith.constant 0 : index
    %c0_9 = arith.constant 0 : index
    %13 = vector.load %arg2[%c1, %c0_8, %c0_9] : memref<3x64x128xf32, #tpu.memory_space<vmem>>, vector<1x64x128xf32>
    %14 = vector.shape_cast %13 : vector<1x64x128xf32> to vector<64x128xf32>
    %cst_10 = arith.constant dense<0.000000e+00> : vector<16x128xf32>
    %15 = tpu.matmul %1, %14, %cst_10 {dimension_numbers = #tpu.dot_dimension_numbers<[1], [0], [0], [1], [0, 0, 1, 1], [], []>} : vector<16x64xf32>, vector<64x128xf32>, vector<16x128xf32> -> vector<16x128xf32>
    %16 = arith.addf %12, %15 : vector<16x128xf32>
    %c15_i32 = arith.constant 15 : i32
    %17 = tpu.dynamic_rotate %1 by %c15_i32 dim 0 : vector<16x64xf32>, i32 -> vector<16x64xf32>
    %18 = tpu.iota {dimensions = array<i32: 0>} : vector<16x64xi32>
    %c15_i32_11 = arith.constant 15 : i32
    %19 = vector.broadcast %c15_i32_11 : i32 to vector<16x64xi32>
    %20 = arith.cmpi slt, %18, %19 : vector<16x64xi32>
    %cst_12 = arith.constant 0.000000e+00 : f32
    %21 = vector.broadcast %cst_12 : f32 to vector<16x64xf32>
    %22 = arith.select %20, %17, %21 : vector<16x64xi1>, vector<16x64xf32>
    %c2 = arith.constant 2 : index
    %c0_13 = arith.constant 0 : index
    %c0_14 = arith.constant 0 : index
    %23 = vector.load %arg2[%c2, %c0_13, %c0_14] : memref<3x64x128xf32, #tpu.memory_space<vmem>>, vector<1x64x128xf32>
    %24 = vector.shape_cast %23 : vector<1x64x128xf32> to vector<64x128xf32>
    %cst_15 = arith.constant dense<0.000000e+00> : vector<16x128xf32>
    %25 = tpu.matmul %22, %24, %cst_15 {dimension_numbers = #tpu.dot_dimension_numbers<[1], [0], [0], [1], [0, 0, 1, 1], [], []>} : vector<16x64xf32>, vector<64x128xf32>, vector<16x128xf32> -> vector<16x128xf32>
    %26 = arith.addf %16, %25 : vector<16x128xf32>
    %c0_16 = arith.constant 0 : index
    %c0_17 = arith.constant 0 : index
    %27 = vector.load %arg3[%c0_16, %c0_17] : memref<1x128xf32, #tpu.memory_space<vmem>>, vector<1x128xf32>
    %28 = vector.broadcast %27 : vector<1x128xf32> to vector<16x128xf32>
    %29 = arith.addf %26, %28 : vector<16x128xf32>
    %cst_18 = arith.constant 0.000000e+00 : f32
    %30 = vector.broadcast %cst_18 : f32 to vector<16x128xf32>
    %31 = arith.maximumf %29, %30 : vector<16x128xf32>
    %cst_19 = arith.constant 0.000000e+00 : f32
    %32 = vector.broadcast %cst_19 : f32 to vector<16x128xf32>
    %c1_i32_20 = arith.constant 1 : i32
    %33 = tpu.dynamic_rotate %31 by %c1_i32_20 dim 0 : vector<16x128xf32>, i32 -> vector<16x128xf32>
    %34 = tpu.iota {dimensions = array<i32: 0>} : vector<16x128xi32>
    %c1_i32_21 = arith.constant 1 : i32
    %35 = vector.broadcast %c1_i32_21 : i32 to vector<16x128xi32>
    %36 = arith.cmpi sge, %34, %35 : vector<16x128xi32>
    %cst_22 = arith.constant 0.000000e+00 : f32
    %37 = vector.broadcast %cst_22 : f32 to vector<16x128xf32>
    %38 = arith.select %36, %33, %37 : vector<16x128xi1>, vector<16x128xf32>
    %c0_23 = arith.constant 0 : index
    %c0_24 = arith.constant 0 : index
    %c0_25 = arith.constant 0 : index
    %39 = vector.load %arg4[%c0_23, %c0_24, %c0_25] : memref<3x128x128xf32, #tpu.memory_space<vmem>>, vector<1x128x128xf32>
    %40 = vector.shape_cast %39 : vector<1x128x128xf32> to vector<128x128xf32>
    %cst_26 = arith.constant dense<0.000000e+00> : vector<16x128xf32>
    %41 = tpu.matmul %38, %40, %cst_26 {dimension_numbers = #tpu.dot_dimension_numbers<[1], [0], [0], [1], [0, 0, 1, 1], [], []>} : vector<16x128xf32>, vector<128x128xf32>, vector<16x128xf32> -> vector<16x128xf32>
    %42 = arith.addf %32, %41 : vector<16x128xf32>
    %c1_27 = arith.constant 1 : index
    %c0_28 = arith.constant 0 : index
    %c0_29 = arith.constant 0 : index
    %43 = vector.load %arg4[%c1_27, %c0_28, %c0_29] : memref<3x128x128xf32, #tpu.memory_space<vmem>>, vector<1x128x128xf32>
    %44 = vector.shape_cast %43 : vector<1x128x128xf32> to vector<128x128xf32>
    %cst_30 = arith.constant dense<0.000000e+00> : vector<16x128xf32>
    %45 = tpu.matmul %31, %44, %cst_30 {dimension_numbers = #tpu.dot_dimension_numbers<[1], [0], [0], [1], [0, 0, 1, 1], [], []>} : vector<16x128xf32>, vector<128x128xf32>, vector<16x128xf32> -> vector<16x128xf32>
    %46 = arith.addf %42, %45 : vector<16x128xf32>
    %c15_i32_31 = arith.constant 15 : i32
    %47 = tpu.dynamic_rotate %31 by %c15_i32_31 dim 0 : vector<16x128xf32>, i32 -> vector<16x128xf32>
    %48 = tpu.iota {dimensions = array<i32: 0>} : vector<16x128xi32>
    %c15_i32_32 = arith.constant 15 : i32
    %49 = vector.broadcast %c15_i32_32 : i32 to vector<16x128xi32>
    %50 = arith.cmpi slt, %48, %49 : vector<16x128xi32>
    %cst_33 = arith.constant 0.000000e+00 : f32
    %51 = vector.broadcast %cst_33 : f32 to vector<16x128xf32>
    %52 = arith.select %50, %47, %51 : vector<16x128xi1>, vector<16x128xf32>
    %c2_34 = arith.constant 2 : index
    %c0_35 = arith.constant 0 : index
    %c0_36 = arith.constant 0 : index
    %53 = vector.load %arg4[%c2_34, %c0_35, %c0_36] : memref<3x128x128xf32, #tpu.memory_space<vmem>>, vector<1x128x128xf32>
    %54 = vector.shape_cast %53 : vector<1x128x128xf32> to vector<128x128xf32>
    %cst_37 = arith.constant dense<0.000000e+00> : vector<16x128xf32>
    %55 = tpu.matmul %52, %54, %cst_37 {dimension_numbers = #tpu.dot_dimension_numbers<[1], [0], [0], [1], [0, 0, 1, 1], [], []>} : vector<16x128xf32>, vector<128x128xf32>, vector<16x128xf32> -> vector<16x128xf32>
    %56 = arith.addf %46, %55 : vector<16x128xf32>
    %c0_38 = arith.constant 0 : index
    %c0_39 = arith.constant 0 : index
    %57 = vector.load %arg5[%c0_38, %c0_39] : memref<1x128xf32, #tpu.memory_space<vmem>>, vector<1x128xf32>
    %58 = vector.broadcast %57 : vector<1x128xf32> to vector<16x128xf32>
    %59 = arith.addf %56, %58 : vector<16x128xf32>
    %cst_40 = arith.constant 0.000000e+00 : f32
    %60 = vector.broadcast %cst_40 : f32 to vector<16x128xf32>
    %61 = arith.maximumf %59, %60 : vector<16x128xf32>
    %c0_41 = arith.constant 0 : index
    %c0_42 = arith.constant 0 : index
    %c0_43 = arith.constant 0 : index
    %62 = vector.load %arg6[%c0_41, %c0_42, %c0_43] : memref<1x16x128xf32, #tpu.memory_space<vmem>>, vector<1x16x128xf32>
    %63 = vector.shape_cast %62 : vector<1x16x128xf32> to vector<16x128xf32>
    %64 = vector.shape_cast %61 : vector<16x128xf32> to vector<1x16x128xf32>
    tpu.vector_store %arg6[%c0_41, %c0_42, %c0_43], %64 {strides = array<i32>} : memref<1x16x128xf32, #tpu.memory_space<vmem>>, vector<1x16x128xf32>,
    return
  }
  func.func @transform_0(%arg0: i32) -> (i32, i32, i32) {
    %c0_i32 = arith.constant 0 : i32
    %c0_i32_0 = arith.constant 0 : i32
    %c0_i32_1 = arith.constant 0 : i32
    return %arg0, %c0_i32, %c0_i32_0 : i32, i32, i32
  }
  func.func @transform_1(%arg0: i32) -> (i32, i32, i32) {
    %c0_i32 = arith.constant 0 : i32
    %c0_i32_0 = arith.constant 0 : i32
    %c0_i32_1 = arith.constant 0 : i32
    %c0_i32_2 = arith.constant 0 : i32
    return %c0_i32, %c0_i32_0, %c0_i32_1 : i32, i32, i32
  }
  func.func @transform_2(%arg0: i32) -> (i32, i32) {
    %c0_i32 = arith.constant 0 : i32
    %c0_i32_0 = arith.constant 0 : i32
    %c0_i32_1 = arith.constant 0 : i32
    return %c0_i32, %c0_i32_0 : i32, i32
  }
  func.func @transform_3(%arg0: i32) -> (i32, i32, i32) {
    %c0_i32 = arith.constant 0 : i32
    %c0_i32_0 = arith.constant 0 : i32
    %c0_i32_1 = arith.constant 0 : i32
    %c0_i32_2 = arith.constant 0 : i32
    return %c0_i32, %c0_i32_0, %c0_i32_1 : i32, i32, i32
  }
  func.func @transform_4(%arg0: i32) -> (i32, i32) {
    %c0_i32 = arith.constant 0 : i32
    %c0_i32_0 = arith.constant 0 : i32
    %c0_i32_1 = arith.constant 0 : i32
    return %c0_i32, %c0_i32_0 : i32, i32
  }
  func.func @transform_5(%arg0: i32) -> (i32, i32, i32) {
    %c0_i32 = arith.constant 0 : i32
    %c0_i32_0 = arith.constant 0 : i32
    %c0_i32_1 = arith.constant 0 : i32
    return %arg0, %c0_i32, %c0_i32_0 : i32, i32, i32
  }
}

</mosaic_0001>

<bundles_post_ra>
// kernel: tile.13
= control target key start
LH: loop header
LB: loop body
LE: loop exit
PB: predicated region body
PF: predicated region fallthrough
CT: control target
= control target key end

     0   :  { %s28_s0 = inlined_call_operand.vmem [shape: f32[8], index: 0, kind: input, shape index: {}]   ;;  %s29_s1 = inlined_call_operand.vmem [shape: f32[16,8], index: 1, kind: output, shape index: {}]  }
   0x1   :  { %v4_v0 = vld [vmem:[%s28_s0] ss:$0 sm:$0xff] }
   0x2   :  { %5 = vst [vmem:[%s29_s1] sm:$0xff] %v4_v0  ;;  %8 = vst [vmem:[%s29_s1 + $0x8] sm:$0xff] %v4_v0 }

// kernel: tile.14
= control target key start
LH: loop header
LB: loop body
LE: loop exit
PB: predicated region body
PF: predicated region fallthrough
CT: control target
= control target key end

     0   :  { %s133_s10 = smov 120   ;;  %s134_s11 = smov 104   ;;  %vm3_vm0 = vcmask 64512   ;;  %vm9_vm1 = vcmask 1048512   ;;  %vm15_vm2 = vcmask 982912   ;;  %vm21_vm3 = vcmask 917312   ;;  %s209_s0 = inlined_call_operand.vmem [shape: f32[16,8], index: 0, kind: input, shape index: {}]   ;;  %s210_s1 = inlined_call_operand.vmem [shape: f32[1,128], index: 1, kind: output, shape index: {}]  }
   0x1   :  { %v103_v0 = vld [vmem:[%s209_s0 + $0xf] sm:$0x1]   ;;  %v105_v1 = vld [vmem:[%s209_s0 + $0xd] sm:$0x1]   ;;  %v104_v2 = vld [vmem:[%s209_s0 + $0xe] sm:$0x1]  }
   0x2   :  { %7 = vrot.lane.b32.xlu0 %v103_v0, %s133_s10  ;;  %19 = vrot.lane.b32.xlu1 %v105_v1, %s134_s11  ;;  %v106_v3 = vld [vmem:[%s209_s0 + $0xc] sm:$0x1]   ;;  %s135_s16 = smov 112   ;;  %s136_s17 = smov 96   ;;  %v107_v4 = vld [vmem:[%s209_s0 + $0xb] sm:$0x1]  }
   0x3   :  { %v108_v5 = vld [vmem:[%s209_s0 + $0xa] sm:$0x1]   ;;  %v2_v6 = vld [vmem:[%s209_s0] sm:$0x1]   ;;  %s137_s24 = smov 88   ;;  %s138_s25 = smov 80  }
   0x4   :  { %4 = vst.msk [vmem:[#allocation0] sm:$0x1] %vm3_vm0, %v2_v6   ;;  %v109_v7 = vld [vmem:[%s209_s0 + $0x9] sm:$0x1]   ;;  %v110_v8 = vld [vmem:[%s209_s0 + $0x8] sm:$0x1]  }
   0x5   :  { %s139_s30 = smov 72   ;;  %s140_s2 = smov 64   ;;  %v111_v9 = vld [vmem:[%s209_s0 + $0x7] sm:$0x1]   ;;  %v112_v10 = vld [vmem:[%s209_s0 + $0x6] sm:$0x1]  }
   0x6   :  { %13 = vrot.lane.b32.xlu0 %v104_v2, %s135_s16  ;;  %25 = vrot.lane.b32.xlu1 %v106_v3, %s136_s17  ;;  %s141_s7 = smov 56   ;;  %s142_s8 = smov 48   ;;  %v113_v11 = vld [vmem:[%s209_s0 + $0x5] sm:$0x1]   ;;  %v114_v12 = vld [vmem:[%s209_s0 + $0x4] sm:$0x1]  }
   0x7   :  { %s143_s13 = smov 40   ;;  %s144_s14 = smov 32   ;;  %v115_v13 = vld [vmem:[%s209_s0 + $0x3] sm:$0x1]   ;;  %v116_v14 = vld [vmem:[%s209_s0 + $0x2] sm:$0x1]  }
   0x8   :  { %s145_s19 = smov 24   ;;  %s146_s20 = smov 16   ;;  %v117_v15 = vld [vmem:[%s209_s0 + $0x1] sm:$0x1]   ;;  %vm27_vm4 = vcmask 851712   ;;  %vm33_vm5 = vcmask 786112  }
   0x9   :  { %s147_s0 = smov 8   ;;  %vm39_vm6 = vcmask 720512   ;;  %vm45_vm7 = vcmask 654912   ;;  %vm51_vm8 = vcmask 589312   ;;  %vm57_vm9 = vcmask 523712  }
   0xa   :  { %31 = vrot.lane.b32.xlu0 %v107_v4, %s137_s24  ;;  %37 = vrot.lane.b32.xlu1 %v108_v5, %s138_s25  ;;  %vm63_vm10 = vcmask 458112   ;;  %vm69_vm11 = vcmask 392512   ;;  %vm75_vm12 = vcmask 326912   ;;  %vm81_vm13 = vcmask 261312  }
   0xb   :  { %vm87_vm14 = vcmask 195712   ;;  %vm93_vm15 = vcmask 130112  }
   0xe   :  { %43 = vrot.lane.b32.xlu0 %v109_v7, %s139_s30  ;;  %49 = vrot.lane.b32.xlu1 %v110_v8, %s140_s2 }
  0x12   :  { %55 = vrot.lane.b32.xlu0 %v111_v9, %s141_s7  ;;  %61 = vrot.lane.b32.xlu1 %v112_v10, %s142_s8 }
  0x16   :  { %67 = vrot.lane.b32.xlu0 %v113_v11, %s143_s13  ;;  %73 = vrot.lane.b32.xlu1 %v114_v12, %s144_s14 }
  0x1a   :  { %79 = vrot.lane.b32.xlu0 %v115_v13, %s145_s19  ;;  %85 = vrot.lane.b32.xlu1 %v116_v14, %s146_s20 }
  0x1e   :  { %91 = vrot.lane.b32.xlu0 %v117_v15, %s147_s0 }
  0x74   :  { %v8_v16 = vpop.permute.xlu0 %7   ;;  %v20_v17 = vpop.permute.xlu1 %19  }
  0x75   :  { %10 = vst.msk [vmem:[#allocation0] sm:$0x1] %vm9_vm1, %v8_v16  }
  0x78   :  { %v14_v18 = vpop.permute.xlu0 %13   ;;  %v26_v19 = vpop.permute.xlu1 %25  }
  0x79   :  { %16 = vst.msk [vmem:[#allocation0] sm:$0x1] %vm15_vm2, %v14_v18  }
  0x7a   :  { %22 = vst.msk [vmem:[#allocation0] sm:$0x1] %vm21_vm3, %v20_v17  }
  0x7b   :  { %28 = vst.msk [vmem:[#allocation0] sm:$0x1] %vm27_vm4, %v26_v19  }
  0x7c   :  { %v32_v20 = vpop.permute.xlu0 %31   ;;  %v38_v21 = vpop.permute.xlu1 %37  }
  0x7d   :  { %34 = vst.msk [vmem:[#allocation0] sm:$0x1] %vm33_vm5, %v32_v20  }
  0x7e   :  { %40 = vst.msk [vmem:[#allocation0] sm:$0x1] %vm39_vm6, %v38_v21  }
  0x80   :  { %v44_v22 = vpop.permute.xlu0 %43   ;;  %v50_v23 = vpop.permute.xlu1 %49  }
  0x81   :  { %46 = vst.msk [vmem:[#allocation0] sm:$0x1] %vm45_vm7, %v44_v22  }
  0x82   :  { %52 = vst.msk [vmem:[#allocation0] sm:$0x1] %vm51_vm8, %v50_v23  }
  0x84   :  { %v56_v24 = vpop.permute.xlu0 %55   ;;  %v62_v25 = vpop.permute.xlu1 %61  }
  0x85   :  { %58 = vst.msk [vmem:[#allocation0] sm:$0x1] %vm57_vm9, %v56_v24  }
  0x86   :  { %64 = vst.msk [vmem:[#allocation0] sm:$0x1] %vm63_vm10, %v62_v25  }
  0x88   :  { %v68_v26 = vpop.permute.xlu0 %67   ;;  %v74_v27 = vpop.permute.xlu1 %73  }
  0x89   :  { %70 = vst.msk [vmem:[#allocation0] sm:$0x1] %vm69_vm11, %v68_v26  }
  0x8a   :  { %76 = vst.msk [vmem:[#allocation0] sm:$0x1] %vm75_vm12, %v74_v27  }
  0x8c   :  { %v80_v28 = vpop.permute.xlu0 %79   ;;  %v86_v29 = vpop.permute.xlu1 %85  }
  0x8d   :  { %82 = vst.msk [vmem:[#allocation0] sm:$0x1] %vm81_vm13, %v80_v28  }
  0x8e   :  { %88 = vst.msk [vmem:[#allocation0] sm:$0x1] %vm87_vm14, %v86_v29  }
  0x90   :  { %v92_v30 = vpop.permute.xlu0 %91  }
  0x91   :  { %94 = vst.msk [vmem:[#allocation0] sm:$0x1] %vm93_vm15, %v92_v30  }
  0x98   :  { %v99_v31 = vld [vmem:[#allocation0] sm:$0x1] }
  0x99   :  { %102 = vst [vmem:[%s210_s1] sm:$0x1] %v99_v31 }

// kernel: double_convolution.1
= control target key start
LH: loop header
LB: loop body
LE: loop exit
PB: predicated region body
PF: predicated region fallthrough
CT: control target
= control target key end

     0   :  { %s1251_s18 = smov 0   ;;  %s1551_s0 = inlined_call_operand.vmem [shape: f32[2,16,64], index: 0, kind: input, shape index: {}]   ;;  %s1552_s1 = inlined_call_operand.vmem [shape: f32[3,64,128], index: 1, kind: input, shape index: {}]   ;;  %s1553_s2 = inlined_call_operand.vmem [shape: f32[1,128], index: 2, kind: input, shape index: {}]   ;;  %s1554_s3 = inlined_call_operand.vmem [shape: f32[3,128,128], index: 3, kind: input, shape index: {}]   ;;  %s1555_s4 = inlined_call_operand.vmem [shape: f32[1,128], index: 4, kind: input, shape index: {}]   ;;  %s1556_s5 = inlined_call_operand.vmem [shape: f32[2,16,128], index: 5, kind: output, shape index: {}]  }
   0x1 LB: > { %s888_s19 = sadd.s32 4294967295, %s1219_s18   ;;  %p892_p0 = scmp.ge.s32.totalorder %s1219_s18, 1  ;;  %s1219_s18 = sphi %s1251_s18, %s15_s18  }
   0x2   : > { %p187_p1 = scmp.lt.s32.totalorder %s1219_s18, 3 }
   0x4   : > { %p188_p2 = pnand %p892_p0, %p187_p1 }
   0x5   : > { %p215_p3 = scmp.lt.s32.totalorder (!%p188_p2), %s888_s19, 1 }
   0x6   : > { %191 = sbr.rel (%p188_p2) target bundleno = 482 (0x1e2), region = 40 }
   0xb   : > { %v904_v0 = vld [vmem:[%s1552_s1 + $0x78] sm:$0xff]  ;;  %v903_v2 = vld [vmem:[%s1552_s1 + $0x70] sm:$0xff]  ;;  %v229_v3 = vlaneseq  ;;  %v902_v5 = vld [vmem:[%s1552_s1 + $0x68] sm:$0xff]  ;;  %s1558_s19 = smov (!%p215_p3, %s888_s19), 1  ;;  %vm256_vm2 = vcmask 523264  }
   0xc   : > { %v246_v1 = vld [vmem:[%s1552_s1 + $0x38] sm:$0xff]  ;;  %1043 = vmatprep.subr.mxu0 %v904_v0  ;;  %v245_v4 = vld [vmem:[%s1552_s1 + $0x30] sm:$0xff]  ;;  %v244_v6 = vld [vmem:[%s1552_s1 + $0x28] sm:$0xff]  ;;  %s957_s11 = sshll.u32 %s1558_s19, 4 }
   0xd   : > { %1062 = vmatprep.subr.mxu1 %v246_v1  ;;  %1044 = vmatpush3.msra.mxu0 %v904_v0  ;;  %v901_v7 = vld [vmem:[%s1552_s1 + $0x60] sm:$0xff]  ;;  %v1286_v9 = vshrl.u32 %v229_v3, 7  ;;  %v900_v10 = vld [vmem:[%s1552_s1 + $0x58] sm:$0xff]  ;;  %s219_s16 = scalar_lea.vmem %s1551_s0, %s957_s11  ;;  %v899_v16 = vld [vmem:[%s1552_s1 + $0x50] sm:$0xff]  ;;  %s224_s17 = scalar_lea.vmem %s1556_s5, %s957_s11 }
   0xe   : > { %1063 = vmatpush3.msra.mxu1 %v246_v1  ;;  %1045 = vmatprep.subr.mxu0 %v903_v2  ;;  %v243_v8 = vld [vmem:[%s1552_s1 + $0x20] sm:$0xff]  ;;  %v242_v11 = vld [vmem:[%s1552_s1 + $0x18] sm:$0xff]  ;;  %v1301_v13 = vld [vmem:[%s219_s16 + $0x8] sm:$0xff] }
   0xf   : > { %1064 = vmatprep.subr.mxu1 %v245_v4  ;;  %1046 = vmatpush3.msra.mxu0 %v903_v2  ;;  %v1299_v12 = vld [vmem:[%s219_s16] sm:$0xff]  ;;  %v228_v15 = vrot.slane %v1301_v13, 7  ;;  %v241_v17 = vld [vmem:[%s1552_s1 + $0x10] sm:$0xff]  ;;  %vm231_vm0 = vcmp.lt.s32.totalorder %v1286_v9, 1  ;;  %v898_v18 = vld [vmem:[%s1552_s1 + $0x48] sm:$0xff]  ;;  %vm235_vm1 = vcmp.ge.s32.totalorder %v1286_v9, 1 }
  0x10   : > { %1065 = vmatpush3.msra.mxu1 %v245_v4  ;;  %1047 = vmatprep.subr.mxu0 %v902_v5  ;;  %v227_v14 = vrot.slane %v1299_v12, 7  ;;  %v240_v19 = vld [vmem:[%s1552_s1 + $0x8] sm:$0xff]  ;;  %v897_v21 = vld [vmem:[%s1552_s1 + $0x40] sm:$0xff]  ;;  %v419_v23 = vrot.slane %v1299_v12, 1  ;;  %v420_v24 = vrot.slane %v1301_v13, 1  ;;  %vm421_vm3 = vcmp.lt.s32.totalorder %v1286_v9, 7 }
  0x11   : > { %1066 = vmatprep.subr.mxu1 %v244_v6  ;;  %1048 = vmatpush3.msra.mxu0 %v902_v5  ;;  %v239_v22 = vld [vmem:[%s1552_s1] sm:$0xff]  ;;  %v916_v27 = vld [vmem:[%s1552_s1 + $0xb8] sm:$0xff]  ;;  %v915_v30 = vld [vmem:[%s1552_s1 + $0xb0] sm:$0xff]  ;;  %v1371_v37 = vadd.s32 8, %v1286_v9 }
  0x12   : > { %1067 = vmatpush3.msra.mxu1 %v244_v6  ;;  %1049 = vmatprep.subr.mxu0 %v901_v7  ;;  %v233_v20 = vsel %vm231_vm0, %v228_v15, %v227_v14  ;;  %v232_v26 = vsel %vm231_vm0, %v227_v14, %v228_v15  ;;  %v422_v28 = vsel %vm421_vm3, %v419_v23, %v420_v24  ;;  %v935_v29 = vld [vmem:[%s1554_s3 + $0xf8] sm:$0xff]  ;;  %v934_v31 = vld [vmem:[%s1554_s3 + $0xf0] sm:$0xff]  ;;  %v914_v32 = vld [vmem:[%s1552_s1 + $0xa8] sm:$0xff] }
  0x13   : > { %1068 = vmatprep.subr.mxu1 %v243_v8  ;;  %1050 = vmatpush3.msra.mxu0 %v901_v7  ;;  %v237_v25 = vsel %vm235_vm1, %v233_v20, 0.0  ;;  %v933_v33 = vld [vmem:[%s1554_s3 + $0xe8] sm:$0xff]  ;;  %v913_v34 = vld [vmem:[%s1552_s1 + $0xa0] sm:$0xff]  ;;  %v912_v36 = vld [vmem:[%s1552_s1 + $0x98] sm:$0xff]  ;;  %v423_v40 = vsel %vm421_vm3, %v420_v24, %v419_v23  ;;  %vm425_vm4 = vcmp.lt.s32.totalorder %v1371_v37, 15 }
  0x14   : > { %1069 = vmatpush3.msra.mxu1 %v243_v8  ;;  %1051 = vmatprep.subr.mxu0 %v900_v10  ;;  %v932_v35 = vld [vmem:[%s1554_s3 + $0xe0] sm:$0xff]  ;;  %v911_v38 = vld [vmem:[%s1552_s1 + $0x90] sm:$0xff]  ;;  %v910_v39 = vld [vmem:[%s1552_s1 + $0x88] sm:$0xff]  ;;  %v427_v42 = vsel %vm425_vm4, %v423_v40, 0.0 }
  0x15   : > { %1070 = vmatprep.subr.mxu1 %v242_v11  ;;  %1052 = vmatpush3.msra.mxu0 %v900_v10  ;;  %v909_v41 = vld [vmem:[%s1552_s1 + $0x80] sm:$0xff]  ;;  %v552_v43 = vld [vmem:[%s1554_s3 + $0x78] sm:$0xff]  ;;  %v551_v44 = vld [vmem:[%s1554_s3 + $0x70] sm:$0xff] }
  0x16   : > { %1071 = vmatpush3.msra.mxu1 %v242_v11  ;;  %1053 = vmatprep.subr.mxu0 %v899_v16  ;;  %v931_v45 = vld [vmem:[%s1554_s3 + $0xd8] sm:$0xff]  ;;  %v550_v46 = vld [vmem:[%s1554_s3 + $0x68] sm:$0xff]  ;;  %v930_v47 = vld [vmem:[%s1554_s3 + $0xd0] sm:$0xff] }
  0x17   : > { %1072 = vmatprep.subr.mxu1 %v241_v17  ;;  %1054 = vmatpush3.msra.mxu0 %v899_v16  ;;  %v549_v48 = vld [vmem:[%s1554_s3 + $0x60] sm:$0xff]  ;;  %v929_v49 = vld [vmem:[%s1554_s3 + $0xc8] sm:$0xff]  ;;  %v548_v50 = vld [vmem:[%s1554_s3 + $0x58] sm:$0xff] }
  0x18   : > { %1073 = vmatpush3.msra.mxu1 %v241_v17  ;;  %1055 = vmatprep.subr.mxu0 %v898_v18  ;;  %v928_v51 = vld [vmem:[%s1554_s3 + $0xc0] sm:$0xff]  ;;  %v547_v52 = vld [vmem:[%s1554_s3 + $0x50] sm:$0xff]  ;;  %v927_v53 = vld [vmem:[%s1554_s3 + $0xb8] sm:$0xff] }
  0x19   : > { %1074 = vmatprep.subr.mxu1 %v240_v19  ;;  %1056 = vmatpush3.msra.mxu0 %v898_v18  ;;  %v546_v54 = vld [vmem:[%s1554_s3 + $0x48] sm:$0xff]  ;;  %v926_v55 = vld [vmem:[%s1554_s3 + $0xb0] sm:$0xff]  ;;  %v545_v56 = vld [vmem:[%s1554_s3 + $0x40] sm:$0xff] }
  0x1a   : > { %1075 = vmatpush3.msra.mxu1 %v240_v19  ;;  %1057 = vmatprep.subr.mxu0 %v897_v21  ;;  %v925_v57 = vld [vmem:[%s1554_s3 + $0xa8] sm:$0xff]  ;;  %v544_v58 = vld [vmem:[%s1554_s3 + $0x38] sm:$0xff]  ;;  %v924_v59 = vld [vmem:[%s1554_s3 + $0xa0] sm:$0xff] }
  0x1b   : > { %1076 = vmatprep.subr.mxu1 %v239_v22  ;;  %1058 = vmatpush3.msra.mxu0 %v897_v21  ;;  %v543_v60 = vld [vmem:[%s1554_s3 + $0x30] sm:$0xff]  ;;  %v923_v61 = vld [vmem:[%s1554_s3 + $0x98] sm:$0xff]  ;;  %v542_v62 = vld [vmem:[%s1554_s3 + $0x28] sm:$0xff] }
  0x1c   : > { %1059 = vmatprep.mubr.msk.f32.mxu0 %vm256_vm2, %v1299_v12  ;;  %1077 = vmatpush3.msra.mxu1 %v239_v22  ;;  %v922_v63 = vld [vmem:[%s1554_s3 + $0x90] sm:$0xff]  ;;  %v541_v0 = vld [vmem:[%s1554_s3 + $0x20] sm:$0xff]  ;;  %v921_v1 = vld [vmem:[%s1554_s3 + $0x88] sm:$0xff] }
  0x1d   : > { %1078 = vmatprep.mubr.msk.f32.mxu1 %vm256_vm2, %v237_v25  ;;  %1060 = vmatmul.mubr.msk.f32.vlgmr.msra.gmra.mxu0 %vm256_vm2, %v1301_v13  ;;  %v540_v2 = vld [vmem:[%s1554_s3 + $0x18] sm:$0xff]  ;;  %v920_v3 = vld [vmem:[%s1554_s3 + $0x80] sm:$0xff]  ;;  %v539_v4 = vld [vmem:[%s1554_s3 + $0x10] sm:$0xff] }
  0x1e   : > { %1079 = vmatmul.mubr.msk.f32.vlgmr.msra.gmra.mxu1 %vm256_vm2, %v232_v26  ;;  %1081 = vmatprep.subr.mxu0 %v916_v27  ;;  %v538_v5 = vld [vmem:[%s1554_s3 + $0x8] sm:$0xff]  ;;  %v952_v6 = vld [vmem:[%s1554_s3 + $0x178] sm:$0xff]  ;;  %v537_v7 = vld [vmem:[%s1554_s3] sm:$0xff] }
  0x1f   : > { %1097 = vmatprep.mubr.msk.f32.mxu0 %vm256_vm2, %v422_v28  ;;  %1082 = vmatpush3.msra.mxu0 %v916_v27  ;;  %v919_v15 = vld [vmem:[%s1553_s2] ss:$0 sm:$0xff]  ;;  %v951_v26 = vld [vmem:[%s1554_s3 + $0x170] sm:$0xff] }
  0x20   : > { %1100 = vmatprep.subr.mxu1 %v935_v29  ;;  %1083 = vmatprep.subr.mxu0 %v915_v30  ;;  %v943_v40 = vld [vmem:[%s1554_s3 + $0x130] sm:$0xff] }
  0x21   : > { %1101 = vmatpush3.msra.mxu1 %v935_v29  ;;  %1084 = vmatpush3.msra.mxu0 %v915_v30 }
  0x22   : > { %1102 = vmatprep.subr.mxu1 %v934_v31  ;;  %1085 = vmatprep.subr.mxu0 %v914_v32 }
  0x23   : > { %1103 = vmatpush3.msra.mxu1 %v934_v31  ;;  %1086 = vmatpush3.msra.mxu0 %v914_v32  ;;  %v950_v32 = vld [vmem:[%s1554_s3 + $0x168] sm:$0xff] }
  0x24   : > { %1104 = vmatprep.subr.mxu1 %v933_v33  ;;  %1087 = vmatprep.subr.mxu0 %v913_v34 }
  0x25   : > { %1105 = vmatpush3.msra.mxu1 %v933_v33  ;;  %1088 = vmatpush3.msra.mxu0 %v913_v34  ;;  %v949_v33 = vld [vmem:[%s1554_s3 + $0x160] sm:$0xff]  ;;  %v948_v34 = vld [vmem:[%s1554_s3 + $0x158] sm:$0xff] }
  0x26   : > { %1106 = vmatprep.subr.mxu1 %v932_v35  ;;  %1089 = vmatprep.subr.mxu0 %v912_v36 }
  0x27   : > { %1107 = vmatpush3.msra.mxu1 %v932_v35  ;;  %1090 = vmatpush3.msra.mxu0 %v912_v36  ;;  %v947_v35 = vld [vmem:[%s1554_s3 + $0x150] sm:$0xff]  ;;  %v946_v36 = vld [vmem:[%s1554_s3 + $0x148] sm:$0xff] }
  0x28   : > { %1091 = vmatprep.subr.mxu0 %v911_v38  ;;  %1108 = vmatprep.subr.mxu1 %v931_v45 }
  0x29   : > { %1092 = vmatpush3.msra.mxu0 %v911_v38  ;;  %1109 = vmatpush3.msra.mxu1 %v931_v45  ;;  %v945_v38 = vld [vmem:[%s1554_s3 + $0x140] sm:$0xff]  ;;  %v938_v45 = vld [vmem:[%s1554_s3 + $0x108] sm:$0xff] }
  0x2a   : > { %1093 = vmatprep.subr.mxu0 %v910_v39  ;;  %1110 = vmatprep.subr.mxu1 %v930_v47 }
  0x2b   : > { %1094 = vmatpush3.msra.mxu0 %v910_v39  ;;  %1111 = vmatpush3.msra.mxu1 %v930_v47  ;;  %v944_v39 = vld [vmem:[%s1554_s3 + $0x138] sm:$0xff] }
  0x2c   : > { %1095 = vmatprep.subr.mxu0 %v909_v41  ;;  %1112 = vmatprep.subr.mxu1 %v929_v49 }
  0x2d   : > { %1096 = vmatpush3.msra.mxu0 %v909_v41  ;;  %1113 = vmatpush3.msra.mxu1 %v929_v49  ;;  %v942_v41 = vld [vmem:[%s1554_s3 + $0x128] sm:$0xff] }
  0x2e   : > { %1098 = vmatmul.mubr.msk.f32.vlgmr.msra.gmra.mxu0 %vm256_vm2, %v427_v42  ;;  %1135 = vmatprep.subr.mxu0 %v552_v43  ;;  %v941_v42 = vld [vmem:[%s1554_s3 + $0x120] sm:$0xff] }
  0x2f   : > { %1136 = vmatpush3.msra.mxu0 %v552_v43  ;;  %1114 = vmatprep.subr.mxu1 %v928_v51  ;;  %v940_v43 = vld [vmem:[%s1554_s3 + $0x118] sm:$0xff] }
  0x30   : > { %1137 = vmatprep.subr.mxu0 %v551_v44  ;;  %1115 = vmatpush3.msra.mxu1 %v928_v51 }
  0x31   : > { %1138 = vmatpush3.msra.mxu0 %v551_v44  ;;  %1116 = vmatprep.subr.mxu1 %v927_v53  ;;  %v939_v44 = vld [vmem:[%s1554_s3 + $0x110] sm:$0xff] }
  0x32   : > { %1139 = vmatprep.subr.mxu0 %v550_v46  ;;  %1117 = vmatpush3.msra.mxu1 %v927_v53 }
  0x33   : > { %1140 = vmatpush3.msra.mxu0 %v550_v46  ;;  %1118 = vmatprep.subr.mxu1 %v926_v55  ;;  %v937_v46 = vld [vmem:[%s1554_s3 + $0x100] sm:$0xff] }
  0x34   : > { %1141 = vmatprep.subr.mxu0 %v549_v48  ;;  %1119 = vmatpush3.msra.mxu1 %v926_v55 }
  0x35   : > { %1142 = vmatpush3.msra.mxu0 %v549_v48  ;;  %1120 = vmatprep.subr.mxu1 %v925_v57 }
  0x36   : > { %1143 = vmatprep.subr.mxu0 %v548_v50  ;;  %1121 = vmatpush3.msra.mxu1 %v925_v57 }
  0x37   : > { %1144 = vmatpush3.msra.mxu0 %v548_v50  ;;  %1122 = vmatprep.subr.mxu1 %v924_v59 }
  0x38   : > { %1145 = vmatprep.subr.mxu0 %v547_v52  ;;  %1123 = vmatpush3.msra.mxu1 %v924_v59 }
  0x39   : > { %1146 = vmatpush3.msra.mxu0 %v547_v52  ;;  %1124 = vmatprep.subr.mxu1 %v923_v61 }
  0x3a   : > { %1147 = vmatprep.subr.mxu0 %v546_v54  ;;  %1125 = vmatpush3.msra.mxu1 %v923_v61 }
  0x3b   : > { %1148 = vmatpush3.msra.mxu0 %v546_v54  ;;  %1126 = vmatprep.subr.mxu1 %v922_v63  ;;  %v954_v54 = vld [vmem:[%s1555_s4] ss:$0 sm:$0xff] }
  0x3c   : > { %1149 = vmatprep.subr.mxu0 %v545_v56  ;;  %1127 = vmatpush3.msra.mxu1 %v922_v63 }
  0x3d   : > { %1150 = vmatpush3.msra.mxu0 %v545_v56  ;;  %1128 = vmatprep.subr.mxu1 %v921_v1 }
  0x3e   : > { %1151 = vmatprep.subr.mxu0 %v544_v58  ;;  %1129 = vmatpush3.msra.mxu1 %v921_v1 }
  0x3f   : > { %1152 = vmatpush3.msra.mxu0 %v544_v58  ;;  %1130 = vmatprep.subr.mxu1 %v920_v3 }
  0x40   : > { %1153 = vmatprep.subr.mxu0 %v543_v60  ;;  %1131 = vmatpush3.msra.mxu1 %v920_v3 }
  0x41   : > { %1154 = vmatpush3.msra.mxu0 %v543_v60  ;;  %1170 = vmatprep.subr.mxu1 %v952_v6 }
  0x42   : > { %1155 = vmatprep.subr.mxu0 %v542_v62 }
  0x43   : > { %1156 = vmatpush3.msra.mxu0 %v542_v62 }
  0x44   : > { %1157 = vmatprep.subr.mxu0 %v541_v0 }
  0x45   : > { %1158 = vmatpush3.msra.mxu0 %v541_v0 }
  0x46   : > { %1159 = vmatprep.subr.mxu0 %v540_v2 }
  0x47   : > { %1160 = vmatpush3.msra.mxu0 %v540_v2 }
  0x48   : > { %1161 = vmatprep.subr.mxu0 %v539_v4 }
  0x49   : > { %1162 = vmatpush3.msra.mxu0 %v539_v4 }
  0x4a   : > { %1163 = vmatprep.subr.mxu0 %v538_v5 }
  0x4b   : > { %1164 = vmatpush3.msra.mxu0 %v538_v5 }
  0x4c   : > { %1165 = vmatprep.subr.mxu0 %v537_v7 }
  0x4d   : > { %1166 = vmatpush3.msra.mxu0 %v537_v7 }
  0xdd   : > { %v1061_v8 = vpop.f32.mrf.mxu0 }
  0xde   : > { %v1080_v10 = vpop.f32.mrf.mxu1 }
  0xdf   : > { %v329_v11 = vpop.f32.mrf.mxu0  ;;  %v416_v13 = vadd.f32 %v1080_v10, %v1061_v8 }
  0xe0   : > { %v410_v12 = vpop.f32.mrf.mxu1 }
  0xe1   : > { %v411_v16 = vadd.f32 %v410_v12, %v329_v11 }
  0xee   : > { %v1099_v14 = vpop.f32.mrf.mxu0 }
  0xef   : > { %v519_v17 = vadd.f32 %v1099_v14, %v416_v13 }
  0xf0   : > { %v509_v18 = vpop.f32.mrf.mxu0 }
  0xf1   : > { %v528_v19 = vadd.f32 %v919_v15, %v519_v17  ;;  %v518_v20 = vadd.f32 %v509_v18, %v411_v16 }
  0xf3   : > { %v1478_v21 = vmax.f32 %v528_v19, 0.0  ;;  %v527_v22 = vadd.f32 %v919_v15, %v518_v20 }
  0xf5   : > { %v529_v23 = vmax.f32 %v527_v22, 0.0  ;;  %v532_v24 = vrot.slane %v1478_v21, 7  ;;  %v721_v28 = vrot.slane %v1478_v21, 1 }
  0xf7   : > { %v531_v25 = vrot.slane %v529_v23, 7  ;;  %1132 = vmatprep.mubr.f32.mxu1 %v529_v23  ;;  %v720_v27 = vrot.slane %v529_v23, 1 }
  0xf8   : > { %1133 = vmatmul.mubr.f32.vlgmr.msra.gmra.mxu1 %v1478_v21 }
  0xf9   : > { %1171 = vmatpush3.msra.mxu1 %v952_v6  ;;  %v534_v29 = vsel %vm231_vm0, %v532_v24, %v531_v25  ;;  %v722_v30 = vsel %vm421_vm3, %v720_v27, %v721_v28  ;;  %v533_v31 = vsel %vm231_vm0, %v531_v25, %v532_v24  ;;  %v723_v47 = vsel %vm421_vm3, %v721_v28, %v720_v27 }
  0xfa   : > { %1172 = vmatprep.subr.mxu1 %v951_v26  ;;  %1167 = vmatprep.mubr.msk.f32.mxu0 %vm235_vm1, %v534_v29 }
  0xfb   : > { %1173 = vmatpush3.msra.mxu1 %v951_v26  ;;  %1202 = vmatprep.mubr.f32.mxu1 %v722_v30 }
  0xfc   : > { %1168 = vmatmul.mubr.f32.vlgmr.msra.gmra.mxu0 %v533_v31  ;;  %1174 = vmatprep.subr.mxu1 %v950_v32 }
  0xfd   : > { %1175 = vmatpush3.msra.mxu1 %v950_v32 }
  0xfe   : > { %1176 = vmatprep.subr.mxu1 %v949_v33 }
  0xff   : > { %1177 = vmatpush3.msra.mxu1 %v949_v33 }
 0x100   : > { %1178 = vmatprep.subr.mxu1 %v948_v34 }
 0x101   : > { %1179 = vmatpush3.msra.mxu1 %v948_v34 }
 0x102   : > { %1180 = vmatprep.subr.mxu1 %v947_v35 }
 0x103   : > { %1181 = vmatpush3.msra.mxu1 %v947_v35 }
 0x104   : > { %1182 = vmatprep.subr.mxu1 %v946_v36 }
 0x105   : > { %1183 = vmatpush3.msra.mxu1 %v946_v36 }
 0x106   : > { %1184 = vmatprep.subr.mxu1 %v945_v38 }
 0x107   : > { %1185 = vmatpush3.msra.mxu1 %v945_v38 }
 0x108   : > { %1186 = vmatprep.subr.mxu1 %v944_v39 }
 0x109   : > { %1187 = vmatpush3.msra.mxu1 %v944_v39 }
 0x10a   : > { %1188 = vmatprep.subr.mxu1 %v943_v40 }
 0x10b   : > { %1189 = vmatpush3.msra.mxu1 %v943_v40 }
 0x10c   : > { %1190 = vmatprep.subr.mxu1 %v942_v41 }
 0x10d   : > { %1191 = vmatpush3.msra.mxu1 %v942_v41 }
 0x10e   : > { %1192 = vmatprep.subr.mxu1 %v941_v42 }
 0x10f   : > { %1193 = vmatpush3.msra.mxu1 %v941_v42 }
 0x110   : > { %1194 = vmatprep.subr.mxu1 %v940_v43 }
 0x111   : > { %1195 = vmatpush3.msra.mxu1 %v940_v43 }
 0x112   : > { %1196 = vmatprep.subr.mxu1 %v939_v44 }
 0x113   : > { %1197 = vmatpush3.msra.mxu1 %v939_v44 }
 0x114   : > { %1198 = vmatprep.subr.mxu1 %v938_v45 }
 0x115   : > { %1199 = vmatpush3.msra.mxu1 %v938_v45 }
 0x116   : > { %1200 = vmatprep.subr.mxu1 %v937_v46 }
 0x117   : > { %1201 = vmatpush3.msra.mxu1 %v937_v46 }
 0x118   : > { %1203 = vmatmul.mubr.msk.f32.vlgmr.msra.gmra.mxu1 %vm425_vm4, %v723_v47 }
 0x1b8   : > { %v1134_v48 = vpop.f32.mrf.mxu1 }
 0x1ba   : > { %v636_v50 = vpop.f32.mrf.mxu1 }
 0x1bc   : > { %v1169_v49 = vpop.f32.mrf.mxu0 }
 0x1bd   : > { %v717_v52 = vadd.f32 %v1169_v49, %v1134_v48 }
 0x1be   : > { %v711_v51 = vpop.f32.mrf.mxu0 }
 0x1bf   : > { %v712_v55 = vadd.f32 %v711_v51, %v636_v50 }
 0x1d8   : > { %v1204_v53 = vpop.f32.mrf.mxu1 }
 0x1d9   : > { %v819_v56 = vadd.f32 %v1204_v53, %v717_v52 }
 0x1da   : > { %v809_v57 = vpop.f32.mrf.mxu1 }
 0x1db   : > { %v828_v58 = vadd.f32 %v954_v54, %v819_v56  ;;  %v818_v59 = vadd.f32 %v809_v57, %v712_v55 }
 0x1dd   : > { %v830_v9 = vmax.f32 %v828_v58, 0.0  ;;  %v827_v37 = vadd.f32 %v954_v54, %v818_v59 }
 0x1df   : > { %832 = vst [vmem:[%s224_s17 + $0x8] sm:$0xff] %v830_v9  ;;  %v829_v60 = vmax.f32 %v827_v37, 0.0 }
 0x1e1   : > { %831 = vst [vmem:[%s224_s17] sm:$0xff] %v829_v60 }
 0x1e2 PF: > { %s15_s18 = sadd.s32 1, %s1219_s18  }
 0x1e3   : > { %p12_p4 = scmp.ge.s32.totalorder %s15_s18, 4  }
 0x1e5   :  { %14 = sbr.rel (!%p12_p4) target bundleno = 1 (0x1), region = 74 }

</bundles_post_ra>
